<compile_context>
chip_gen: v7x
topology: tpu7x:2x2x1
jax: 0.10.0
libtpu: 0.0.40
codegen_flags: <defaults>
</compile_context>

<pallas_src>
import functools

import jax
import jax.numpy as jnp
from jax.experimental import pallas as pl
from jax.experimental.pallas import tpu as pltpu


def _align8(n):
    return (n + 7) & ~7


def _layout(d_in, h):
    """Static, 8-aligned row offsets of each parameter inside the packed slabs."""
    g = 4 * h
    # main slab (linear1 + LSTM weights), width = 4H lanes
    off_w1 = 0
    off_b1 = _align8(off_w1 + d_in)
    off_wih = _align8(off_b1 + 1)
    off_whh = off_wih + _align8(h)
    off_bl = off_whh + _align8(h)
    main_rows = _align8(off_bl + 1)
    # epilogue slab (linear2 + linear3), width = 4H lanes
    off_w2 = 0
    off_b2 = _align8(off_w2 + h)
    off_w3 = _align8(off_b2 + 1)
    off_b3 = _align8(off_w3 + 1)
    epi_rows = _align8(off_b3 + 1)
    return dict(g=g,
                off_w1=off_w1, off_b1=off_b1, off_wih=off_wih,
                off_whh=off_whh, off_bl=off_bl, main_rows=main_rows,
                off_w2=off_w2, off_b2=off_b2, off_w3=off_w3, off_b3=off_b3,
                epi_rows=epi_rows)


def pack_params(params):
    """Pack the 9 weight/bias tensors into two lane-padded f32 slabs (done once)."""
    d_in, h = params["w1"].shape
    L = _layout(d_in, h)
    g = L["g"]

    main = jnp.zeros((L["main_rows"], g), jnp.float32)
    main = main.at[L["off_w1"]:L["off_w1"] + d_in, 0:h].set(params["w1"])
    main = main.at[L["off_b1"], 0:h].set(params["b1"].reshape(h))
    main = main.at[L["off_wih"]:L["off_wih"] + h, :].set(params["w_ih"])
    main = main.at[L["off_whh"]:L["off_whh"] + h, :].set(params["w_hh"])
    main = main.at[L["off_bl"], :].set(params["b_lstm"].reshape(g))

    epi = jnp.zeros((L["epi_rows"], g), jnp.float32)
    epi = epi.at[L["off_w2"]:L["off_w2"] + h, 0:h].set(params["w2"])
    epi = epi.at[L["off_b2"], 0:h].set(params["b2"].reshape(h))
    epi = epi.at[L["off_w3"], 0:h].set(params["w3"].reshape(h))     # w3^T row
    epi = epi.at[L["off_b3"], 0:1].set(params["b3"].reshape(1))

    return {"main": main, "epi": epi, "d_in": d_in, "h": h}


def _qnet_lstm_kernel(x_ref, hc0_ref, main_ref, epi_hbm_ref,
                      q_ref, hcT_ref,
                      epi_vmem, epi_sem):
    TB, d_in = x_ref.shape
    _, B, H = hc0_ref.shape
    T = TB // B
    L = _layout(d_in, H)

    # Kick off the epilogue-weight fetch now; its DMA hides behind the prologue
    # GEMMs and the serial recurrence.
    epi_copy = pltpu.make_async_copy(epi_hbm_ref, epi_vmem, epi_sem)
    epi_copy.start()

    # ---- Prologue: batched over all T*B rows (MXU-friendly) ----------------
    x = x_ref[...]                                             # (T*B, D_in)
    w1 = main_ref[L["off_w1"]:L["off_w1"] + d_in, 0:H]         # (D_in, H)
    b1 = main_ref[L["off_b1"]:L["off_b1"] + 1, 0:H]            # (1, H)
    a1 = jnp.maximum(
        jnp.dot(x, w1, preferred_element_type=jnp.float32) + b1, 0.0)
    w_ih = main_ref[L["off_wih"]:L["off_wih"] + H, :]          # (H, 4H)
    b_lstm = main_ref[L["off_bl"]:L["off_bl"] + 1, :]          # (1, 4H)
    pre = jnp.dot(a1, w_ih, preferred_element_type=jnp.float32) + b_lstm  # (T*B, 4H)

    # ---- Recurrence: only h @ W_hh + elementwise is serial -----------------
    w_hh = main_ref[L["off_whh"]:L["off_whh"] + H, :]          # hoisted, reused
    h = hc0_ref[0, :, :]                                       # (B, H)
    c = hc0_ref[1, :, :]                                       # (B, H)
    hs_steps = []
    for t in range(T):                                         # fully unrolled (T static)
        gt = pre[t * B:(t + 1) * B, :] + jnp.dot(
            h, w_hh, preferred_element_type=jnp.float32)       # (B, 4H)
        # One EUP sigmoid over the whole gate slab, then lane-slice i/f/o;
        # tanh only on the g-gate lanes.  PyTorch gate order: i, f, g, o.
        sg = jax.nn.sigmoid(gt)
        i_g = sg[:, 0 * H:1 * H]
        f_g = sg[:, 1 * H:2 * H]
        o_g = sg[:, 3 * H:4 * H]
        g_g = jnp.tanh(gt[:, 2 * H:3 * H])
        c = f_g * c + i_g * g_g
        h = o_g * jnp.tanh(c)
        hs_steps.append(h)                                     # stays in vregs

    hcT_ref[0, :, :] = h                                       # final (h_n, c_n)
    hcT_ref[1, :, :] = c

    # ---- Epilogue: batched over all T*B rows --------------------------------
    hs = jnp.concatenate(hs_steps, axis=0)                     # (T*B, H), time-major
    epi_copy.wait()                                            # epilogue weights landed
    w2 = epi_vmem[L["off_w2"]:L["off_w2"] + H, 0:H]            # (H, H)
    b2 = epi_vmem[L["off_b2"]:L["off_b2"] + 1, 0:H]            # (1, H)
    w3r = epi_vmem[L["off_w3"]:L["off_w3"] + 1, 0:H]           # (1, H)
    b3 = epi_vmem[L["off_b3"]:L["off_b3"] + 1, 0:1]            # (1, 1)
    a2 = jnp.maximum(
        jnp.dot(hs, w2, preferred_element_type=jnp.float32) + b2, 0.0)  # (T*B, H)
    # Lane-dense q: one (1, T*B) row instead of a (T*B, 1) column of masked stores.
    q = jnp.dot(w3r, a2.T, preferred_element_type=jnp.float32) + b3    # (1, T*B)
    q_ref[...] = q


def qnetwork_lstm2_forward(packed, state, action, last_action, hidden_in):
    """state/action/last_action: (B, T, *_dim); hidden_in = (h0, c0), each (1, B, H)."""
    h0, c0 = hidden_in
    B, T, _ = state.shape
    H = packed["h"]
    d_in = packed["d_in"]
    main, epi = packed["main"], packed["epi"]

    # Glue (plain JAX): concat + permute to time-major, flatten (T, B) -> T*B rows,
    # and stack (h0, c0) into one array so it is a single input DMA.
    x = jnp.concatenate([state, action, last_action], axis=-1)        # (B, T, D_in)
    x = jnp.transpose(x, (1, 0, 2)).reshape(T * B, d_in).astype(jnp.float32)
    hc0 = jnp.concatenate([h0, c0], axis=0).astype(jnp.float32)       # (2, B, H)

    # Advisory cost estimate so XLA can schedule around this tiny custom call.
    flops = 2 * T * B * (d_in * H + 2 * H * 4 * H + H * H + H)
    nbytes = 4 * (x.size + hc0.size + main.size + epi.size + T * B + 2 * B * H)
    cost = pl.CostEstimate(flops=flops,
                           transcendentals=4 * T * B * H,
                           bytes_accessed=nbytes)

    # Full-array blocks (block == full array, so no (8,128) divisibility issue).
    const = lambda shape: pl.BlockSpec(shape, lambda i: tuple(0 for _ in shape))

    q_row, hcT = pl.pallas_call(
        _qnet_lstm_kernel,
        out_shape=(
            jax.ShapeDtypeStruct((1, T * B), jnp.float32),
            jax.ShapeDtypeStruct((2, B, H), jnp.float32),
        ),
        grid_spec=pltpu.PrefetchScalarGridSpec(
            num_scalar_prefetch=0,
            grid=(1,),                                    # single invocation
            in_specs=[
                const((T * B, d_in)),                     # x (time-major, flattened)
                const((2, B, H)),                         # stacked (h0, c0)
                const(main.shape),                        # packed linear1 + LSTM weights
                pl.BlockSpec(memory_space=pl.ANY),        # packed epilogue weights (manual DMA)
            ],
            out_specs=[
                const((1, T * B)),                        # q (lane-dense row)
                const((2, B, H)),                         # (h_n, c_n)
            ],
            scratch_shapes=[
                pltpu.VMEM(epi.shape, jnp.float32),       # landing buffer for epilogue slab
                pltpu.SemaphoreType.DMA,                  # its completion semaphore
            ],
        ),
        compiler_params=pltpu.CompilerParams(
            dimension_semantics=("arbitrary",),
        ),
        cost_estimate=cost,
    )(x, hc0, main, epi)

    q = jnp.transpose(q_row.reshape(T, B, 1), (1, 0, 2))              # (B, T, 1)
    return q, (hcT[0][None], hcT[1][None])


def _reference_forward(params, state, action, last_action, hidden_in):
    """Pure-JAX reference of the PyTorch forward, for verification."""
    h0, c0 = hidden_in
    x = jnp.concatenate([state, action, last_action], axis=-1)
    x = jnp.transpose(x, (1, 0, 2)).astype(jnp.float32)               # (T, B, D_in)
    a1 = jax.nn.relu(x @ params["w1"] + params["b1"])                 # (T, B, H)
    H = params["w2"].shape[0]

    def step(carry, xt):
        h, c = carry
        g = xt @ params["w_ih"] + h @ params["w_hh"] + params["b_lstm"]
        i = jax.nn.sigmoid(g[:, 0 * H:1 * H])
        f = jax.nn.sigmoid(g[:, 1 * H:2 * H])
        gg = jnp.tanh(g[:, 2 * H:3 * H])
        o = jax.nn.sigmoid(g[:, 3 * H:4 * H])
        c_new = f * c + i * gg
        h_new = o * jnp.tanh(c_new)
        return (h_new, c_new), h_new

    (h_n, c_n), hs = jax.lax.scan(step, (h0[0].astype(jnp.float32),
                                         c0[0].astype(jnp.float32)), a1)
    a2 = jax.nn.relu(hs @ params["w2"] + params["b2"])
    q = a2 @ params["w3"] + params["b3"]
    return jnp.transpose(q, (1, 0, 2)), (h_n[None], c_n[None])


def init_params(key, state_dim, action_dim, hidden_dim):
    """Deterministic synthetic parameter init (shapes match the PyTorch module)."""
    D_in = state_dim + 2 * action_dim
    H = hidden_dim
    ks = jax.random.split(key, 10)
    u = lambda k, shape, s: jax.random.uniform(k, shape, jnp.float32, -s, s)
    return {
        "w1": u(ks[0], (D_in, H), 0.3),
        "b1": u(ks[1], (1, H), 0.3),
        "w_ih": u(ks[2], (H, 4 * H), 0.2),
        "w_hh": u(ks[3], (H, 4 * H), 0.2),
        "b_lstm": u(ks[4], (1, 4 * H), 0.2),   # = b_ih + b_hh folded together
        "w2": u(ks[5], (H, H), 0.2),
        "b2": u(ks[6], (1, H), 0.2),
        "w3": u(ks[7], (H, 1), 0.003),         # linear_weights_init: small uniform
        "b3": u(ks[8], (1, 1), 0.003),
    }


if __name__ == "__main__":
    B, T = 2, 8
    state_dim, action_dim, hidden_dim = 6, 3, 32

    key = jax.random.PRNGKey(0)
    k_p, k_s, k_a, k_la, k_h, k_c = jax.random.split(key, 6)
    params = init_params(k_p, state_dim, action_dim, hidden_dim)
    packed = pack_params(params)           # one-time weight packing (2 slabs)

    state = jax.random.normal(k_s, (B, T, state_dim), jnp.float32)
    action = jax.random.normal(k_a, (B, T, action_dim), jnp.float32)
    last_action = jax.random.normal(k_la, (B, T, action_dim), jnp.float32)
    h0 = jax.random.normal(k_h, (1, B, hidden_dim), jnp.float32)
    c0 = jax.random.normal(k_c, (1, B, hidden_dim), jnp.float32)

    fwd = jax.jit(functools.partial(qnetwork_lstm2_forward, packed))
    q, (h_n, c_n) = fwd(state, action, last_action, (h0, c0))
    jax.block_until_ready((q, h_n, c_n))

    # Verify against a pure-JAX reference of the PyTorch semantics.
    q_ref, (h_ref, c_ref) = _reference_forward(params, state, action, last_action, (h0, c0))
    assert q.shape == (B, T, 1) and h_n.shape == (1, B, hidden_dim)
    assert jnp.allclose(q, q_ref, atol=1e-5, rtol=1e-5)
    assert jnp.allclose(h_n, h_ref, atol=1e-5, rtol=1e-5)
    assert jnp.allclose(c_n, c_ref, atol=1e-5, rtol=1e-5)

    print("KERNEL_OK")
</pallas_src>

<mosaic_0001>
module attributes {stable_mosaic.version = 11 : i64} {
  func.func @_qnet_lstm_kernel(%arg0: i32, %arg1: memref<16x12xf32, #tpu.memory_space<vmem>>, %arg2: memref<2x2x32xf32, #tpu.memory_space<vmem>>, %arg3: memref<96x128xf32, #tpu.memory_space<vmem>>, %arg4: memref<56x128xf32, #tpu.memory_space<any>>, %arg5: memref<1x16xf32, #tpu.memory_space<vmem>>, %arg6: memref<2x2x32xf32, #tpu.memory_space<vmem>>, %arg7: memref<56x128xf32, #tpu.memory_space<vmem>>, %arg8: memref<!tpu.dma_semaphore, #tpu.memory_space<semaphore_mem>>) attributes {dimension_semantics = [#tpu.dimension_semantics<arbitrary>], iteration_bounds = array<i64: 1>, scalar_prefetch = 0 : i64, scratch_operands = 2 : i64, tpu.core_type = #tpu.core_type<tc>, window_params = [{pipeline_mode = #tpu.pipeline_mode<synchronous>, transform_indices = @transform_0, window_bounds = array<i64: 16, 12>}, {pipeline_mode = #tpu.pipeline_mode<synchronous>, transform_indices = @transform_1, window_bounds = array<i64: 2, 2, 32>}, {pipeline_mode = #tpu.pipeline_mode<synchronous>, transform_indices = @transform_2, window_bounds = array<i64: 96, 128>}, {}, {pipeline_mode = #tpu.pipeline_mode<synchronous>, transform_indices = @transform_4, window_bounds = array<i64: 1, 16>}, {pipeline_mode = #tpu.pipeline_mode<synchronous>, transform_indices = @transform_5, window_bounds = array<i64: 2, 2, 32>}]} {
    tpu.enqueue_dma source(%arg4 : memref<56x128xf32, #tpu.memory_space<any>>) target(%arg7 : memref<56x128xf32, #tpu.memory_space<vmem>>) target_semaphore(%arg8 : memref<!tpu.dma_semaphore, #tpu.memory_space<semaphore_mem>>)
    %c0 = arith.constant 0 : index
    %c0_0 = arith.constant 0 : index
    %0 = vector.load %arg1[%c0, %c0_0] : memref<16x12xf32, #tpu.memory_space<vmem>>, vector<16x12xf32>
    %c0_1 = arith.constant 0 : index
    %c0_2 = arith.constant 0 : index
    %1 = vector.load %arg3[%c0_1, %c0_2] : memref<96x128xf32, #tpu.memory_space<vmem>>, vector<12x32xf32>
    %c16 = arith.constant 16 : index
    %c0_3 = arith.constant 0 : index
    %2 = vector.load %arg3[%c16, %c0_3] : memref<96x128xf32, #tpu.memory_space<vmem>>, vector<1x32xf32>
    %cst = arith.constant dense<0.000000e+00> : vector<16x32xf32>
    %3 = tpu.matmul %0, %1, %cst {dimension_numbers = #tpu.dot_dimension_numbers<[1], [0], [0], [1], [0, 0, 1, 1], [], []>} : vector<16x12xf32>, vector<12x32xf32>, vector<16x32xf32> -> vector<16x32xf32>
    %4 = vector.broadcast %2 : vector<1x32xf32> to vector<16x32xf32>
    %5 = arith.addf %3, %4 : vector<16x32xf32>
    %cst_4 = arith.constant 0.000000e+00 : f32
    %6 = vector.broadcast %cst_4 : f32 to vector<16x32xf32>
    %7 = arith.maximumf %5, %6 : vector<16x32xf32>
    %c24 = arith.constant 24 : index
    %c0_5 = arith.constant 0 : index
    %8 = vector.load %arg3[%c24, %c0_5] : memref<96x128xf32, #tpu.memory_space<vmem>>, vector<32x128xf32>
    %c88 = arith.constant 88 : index
    %c0_6 = arith.constant 0 : index
    %9 = vector.load %arg3[%c88, %c0_6] : memref<96x128xf32, #tpu.memory_space<vmem>>, vector<1x128xf32>
    %cst_7 = arith.constant dense<0.000000e+00> : vector<16x128xf32>
    %10 = tpu.matmul %7, %8, %cst_7 {dimension_numbers = #tpu.dot_dimension_numbers<[1], [0], [0], [1], [0, 0, 1, 1], [], []>} : vector<16x32xf32>, vector<32x128xf32>, vector<16x128xf32> -> vector<16x128xf32>
    %11 = vector.broadcast %9 : vector<1x128xf32> to vector<16x128xf32>
    %12 = arith.addf %10, %11 : vector<16x128xf32>
    %c56 = arith.constant 56 : index
    %c0_8 = arith.constant 0 : index
    %13 = vector.load %arg3[%c56, %c0_8] : memref<96x128xf32, #tpu.memory_space<vmem>>, vector<32x128xf32>
    %c0_9 = arith.constant 0 : index
    %c0_10 = arith.constant 0 : index
    %c0_11 = arith.constant 0 : index
    %14 = vector.load %arg2[%c0_9, %c0_10, %c0_11] : memref<2x2x32xf32, #tpu.memory_space<vmem>>, vector<1x2x32xf32>
    %15 = vector.shape_cast %14 : vector<1x2x32xf32> to vector<2x32xf32>
    %c1 = arith.constant 1 : index
    %c0_12 = arith.constant 0 : index
    %c0_13 = arith.constant 0 : index
    %16 = vector.load %arg2[%c1, %c0_12, %c0_13] : memref<2x2x32xf32, #tpu.memory_space<vmem>>, vector<1x2x32xf32>
    %17 = vector.shape_cast %16 : vector<1x2x32xf32> to vector<2x32xf32>
    %18 = vector.extract_strided_slice %12 {offsets = [0, 0], sizes = [2, 128], strides = [1, 1]} : vector<16x128xf32> to vector<2x128xf32>
    %cst_14 = arith.constant dense<0.000000e+00> : vector<2x128xf32>
    %19 = tpu.matmul %15, %13, %cst_14 {dimension_numbers = #tpu.dot_dimension_numbers<[1], [0], [0], [1], [0, 0, 1, 1], [], []>} : vector<2x32xf32>, vector<32x128xf32>, vector<2x128xf32> -> vector<2x128xf32>
    %20 = arith.addf %18, %19 : vector<2x128xf32>
    %21 = arith.negf %20 : vector<2x128xf32>
    %22 = math.exp %21 : vector<2x128xf32>
    %cst_15 = arith.constant 1.000000e+00 : f32
    %23 = vector.broadcast %cst_15 : f32 to vector<2x128xf32>
    %24 = arith.addf %23, %22 : vector<2x128xf32>
    %25 = arith.divf %23, %24 : vector<2x128xf32>
    %26 = vector.extract_strided_slice %25 {offsets = [0, 0], sizes = [2, 32], strides = [1, 1]} : vector<2x128xf32> to vector<2x32xf32>
    %27 = vector.extract_strided_slice %25 {offsets = [0, 32], sizes = [2, 32], strides = [1, 1]} : vector<2x128xf32> to vector<2x32xf32>
    %28 = vector.extract_strided_slice %25 {offsets = [0, 96], sizes = [2, 32], strides = [1, 1]} : vector<2x128xf32> to vector<2x32xf32>
    %29 = vector.extract_strided_slice %20 {offsets = [0, 64], sizes = [2, 32], strides = [1, 1]} : vector<2x128xf32> to vector<2x32xf32>
    %30 = math.tanh %29 : vector<2x32xf32>
    %31 = arith.mulf %27, %17 : vector<2x32xf32>
    %32 = arith.mulf %26, %30 : vector<2x32xf32>
    %33 = arith.addf %31, %32 : vector<2x32xf32>
    %34 = math.tanh %33 : vector<2x32xf32>
    %35 = arith.mulf %28, %34 : vector<2x32xf32>
    %36 = vector.extract_strided_slice %12 {offsets = [2, 0], sizes = [2, 128], strides = [1, 1]} : vector<16x128xf32> to vector<2x128xf32>
    %cst_16 = arith.constant dense<0.000000e+00> : vector<2x128xf32>
    %37 = tpu.matmul %35, %13, %cst_16 {dimension_numbers = #tpu.dot_dimension_numbers<[1], [0], [0], [1], [0, 0, 1, 1], [], []>} : vector<2x32xf32>, vector<32x128xf32>, vector<2x128xf32> -> vector<2x128xf32>
    %38 = arith.addf %36, %37 : vector<2x128xf32>
    %39 = arith.negf %38 : vector<2x128xf32>
    %40 = math.exp %39 : vector<2x128xf32>
    %cst_17 = arith.constant 1.000000e+00 : f32
    %41 = vector.broadcast %cst_17 : f32 to vector<2x128xf32>
    %42 = arith.addf %41, %40 : vector<2x128xf32>
    %43 = arith.divf %41, %42 : vector<2x128xf32>
    %44 = vector.extract_strided_slice %43 {offsets = [0, 0], sizes = [2, 32], strides = [1, 1]} : vector<2x128xf32> to vector<2x32xf32>
    %45 = vector.extract_strided_slice %43 {offsets = [0, 32], sizes = [2, 32], strides = [1, 1]} : vector<2x128xf32> to vector<2x32xf32>
    %46 = vector.extract_strided_slice %43 {offsets = [0, 96], sizes = [2, 32], strides = [1, 1]} : vector<2x128xf32> to vector<2x32xf32>
    %47 = vector.extract_strided_slice %38 {offsets = [0, 64], sizes = [2, 32], strides = [1, 1]} : vector<2x128xf32> to vector<2x32xf32>
    %48 = math.tanh %47 : vector<2x32xf32>
    %49 = arith.mulf %45, %33 : vector<2x32xf32>
    %50 = arith.mulf %44, %48 : vector<2x32xf32>
    %51 = arith.addf %49, %50 : vector<2x32xf32>
    %52 = math.tanh %51 : vector<2x32xf32>
    %53 = arith.mulf %46, %52 : vector<2x32xf32>
    %54 = vector.extract_strided_slice %12 {offsets = [4, 0], sizes = [2, 128], strides = [1, 1]} : vector<16x128xf32> to vector<2x128xf32>
    %cst_18 = arith.constant dense<0.000000e+00> : vector<2x128xf32>
    %55 = tpu.matmul %53, %13, %cst_18 {dimension_numbers = #tpu.dot_dimension_numbers<[1], [0], [0], [1], [0, 0, 1, 1], [], []>} : vector<2x32xf32>, vector<32x128xf32>, vector<2x128xf32> -> vector<2x128xf32>
    %56 = arith.addf %54, %55 : vector<2x128xf32>
    %57 = arith.negf %56 : vector<2x128xf32>
    %58 = math.exp %57 : vector<2x128xf32>
    %cst_19 = arith.constant 1.000000e+00 : f32
    %59 = vector.broadcast %cst_19 : f32 to vector<2x128xf32>
    %60 = arith.addf %59, %58 : vector<2x128xf32>
    %61 = arith.divf %59, %60 : vector<2x128xf32>
    %62 = vector.extract_strided_slice %61 {offsets = [0, 0], sizes = [2, 32], strides = [1, 1]} : vector<2x128xf32> to vector<2x32xf32>
    %63 = vector.extract_strided_slice %61 {offsets = [0, 32], sizes = [2, 32], strides = [1, 1]} : vector<2x128xf32> to vector<2x32xf32>
    %64 = vector.extract_strided_slice %61 {offsets = [0, 96], sizes = [2, 32], strides = [1, 1]} : vector<2x128xf32> to vector<2x32xf32>
    %65 = vector.extract_strided_slice %56 {offsets = [0, 64], sizes = [2, 32], strides = [1, 1]} : vector<2x128xf32> to vector<2x32xf32>
    %66 = math.tanh %65 : vector<2x32xf32>
    %67 = arith.mulf %63, %51 : vector<2x32xf32>
    %68 = arith.mulf %62, %66 : vector<2x32xf32>
    %69 = arith.addf %67, %68 : vector<2x32xf32>
    %70 = math.tanh %69 : vector<2x32xf32>
    %71 = arith.mulf %64, %70 : vector<2x32xf32>
    %72 = vector.extract_strided_slice %12 {offsets = [6, 0], sizes = [2, 128], strides = [1, 1]} : vector<16x128xf32> to vector<2x128xf32>
    %cst_20 = arith.constant dense<0.000000e+00> : vector<2x128xf32>
    %73 = tpu.matmul %71, %13, %cst_20 {dimension_numbers = #tpu.dot_dimension_numbers<[1], [0], [0], [1], [0, 0, 1, 1], [], []>} : vector<2x32xf32>, vector<32x128xf32>, vector<2x128xf32> -> vector<2x128xf32>
    %74 = arith.addf %72, %73 : vector<2x128xf32>
    %75 = arith.negf %74 : vector<2x128xf32>
    %76 = math.exp %75 : vector<2x128xf32>
    %cst_21 = arith.constant 1.000000e+00 : f32
    %77 = vector.broadcast %cst_21 : f32 to vector<2x128xf32>
    %78 = arith.addf %77, %76 : vector<2x128xf32>
    %79 = arith.divf %77, %78 : vector<2x128xf32>
    %80 = vector.extract_strided_slice %79 {offsets = [0, 0], sizes = [2, 32], strides = [1, 1]} : vector<2x128xf32> to vector<2x32xf32>
    %81 = vector.extract_strided_slice %79 {offsets = [0, 32], sizes = [2, 32], strides = [1, 1]} : vector<2x128xf32> to vector<2x32xf32>
    %82 = vector.extract_strided_slice %79 {offsets = [0, 96], sizes = [2, 32], strides = [1, 1]} : vector<2x128xf32> to vector<2x32xf32>
    %83 = vector.extract_strided_slice %74 {offsets = [0, 64], sizes = [2, 32], strides = [1, 1]} : vector<2x128xf32> to vector<2x32xf32>
    %84 = math.tanh %83 : vector<2x32xf32>
    %85 = arith.mulf %81, %69 : vector<2x32xf32>
    %86 = arith.mulf %80, %84 : vector<2x32xf32>
    %87 = arith.addf %85, %86 : vector<2x32xf32>
    %88 = math.tanh %87 : vector<2x32xf32>
    %89 = arith.mulf %82, %88 : vector<2x32xf32>
    %90 = vector.extract_strided_slice %12 {offsets = [8, 0], sizes = [2, 128], strides = [1, 1]} : vector<16x128xf32> to vector<2x128xf32>
    %cst_22 = arith.constant dense<0.000000e+00> : vector<2x128xf32>
    %91 = tpu.matmul %89, %13, %cst_22 {dimension_numbers = #tpu.dot_dimension_numbers<[1], [0], [0], [1], [0, 0, 1, 1], [], []>} : vector<2x32xf32>, vector<32x128xf32>, vector<2x128xf32> -> vector<2x128xf32>
    %92 = arith.addf %90, %91 : vector<2x128xf32>
    %93 = arith.negf %92 : vector<2x128xf32>
    %94 = math.exp %93 : vector<2x128xf32>
    %cst_23 = arith.constant 1.000000e+00 : f32
    %95 = vector.broadcast %cst_23 : f32 to vector<2x128xf32>
    %96 = arith.addf %95, %94 : vector<2x128xf32>
    %97 = arith.divf %95, %96 : vector<2x128xf32>
    %98 = vector.extract_strided_slice %97 {offsets = [0, 0], sizes = [2, 32], strides = [1, 1]} : vector<2x128xf32> to vector<2x32xf32>
    %99 = vector.extract_strided_slice %97 {offsets = [0, 32], sizes = [2, 32], strides = [1, 1]} : vector<2x128xf32> to vector<2x32xf32>
    %100 = vector.extract_strided_slice %97 {offsets = [0, 96], sizes = [2, 32], strides = [1, 1]} : vector<2x128xf32> to vector<2x32xf32>
    %101 = vector.extract_strided_slice %92 {offsets = [0, 64], sizes = [2, 32], strides = [1, 1]} : vector<2x128xf32> to vector<2x32xf32>
    %102 = math.tanh %101 : vector<2x32xf32>
    %103 = arith.mulf %99, %87 : vector<2x32xf32>
    %104 = arith.mulf %98, %102 : vector<2x32xf32>
    %105 = arith.addf %103, %104 : vector<2x32xf32>
    %106 = math.tanh %105 : vector<2x32xf32>
    %107 = arith.mulf %100, %106 : vector<2x32xf32>
    %108 = vector.extract_strided_slice %12 {offsets = [10, 0], sizes = [2, 128], strides = [1, 1]} : vector<16x128xf32> to vector<2x128xf32>
    %cst_24 = arith.constant dense<0.000000e+00> : vector<2x128xf32>
    %109 = tpu.matmul %107, %13, %cst_24 {dimension_numbers = #tpu.dot_dimension_numbers<[1], [0], [0], [1], [0, 0, 1, 1], [], []>} : vector<2x32xf32>, vector<32x128xf32>, vector<2x128xf32> -> vector<2x128xf32>
    %110 = arith.addf %108, %109 : vector<2x128xf32>
    %111 = arith.negf %110 : vector<2x128xf32>
    %112 = math.exp %111 : vector<2x128xf32>
    %cst_25 = arith.constant 1.000000e+00 : f32
    %113 = vector.broadcast %cst_25 : f32 to vector<2x128xf32>
    %114 = arith.addf %113, %112 : vector<2x128xf32>
    %115 = arith.divf %113, %114 : vector<2x128xf32>
    %116 = vector.extract_strided_slice %115 {offsets = [0, 0], sizes = [2, 32], strides = [1, 1]} : vector<2x128xf32> to vector<2x32xf32>
    %117 = vector.extract_strided_slice %115 {offsets = [0, 32], sizes = [2, 32], strides = [1, 1]} : vector<2x128xf32> to vector<2x32xf32>
    %118 = vector.extract_strided_slice %115 {offsets = [0, 96], sizes = [2, 32], strides = [1, 1]} : vector<2x128xf32> to vector<2x32xf32>
    %119 = vector.extract_strided_slice %110 {offsets = [0, 64], sizes = [2, 32], strides = [1, 1]} : vector<2x128xf32> to vector<2x32xf32>
    %120 = math.tanh %119 : vector<2x32xf32>
    %121 = arith.mulf %117, %105 : vector<2x32xf32>
    %122 = arith.mulf %116, %120 : vector<2x32xf32>
    %123 = arith.addf %121, %122 : vector<2x32xf32>
    %124 = math.tanh %123 : vector<2x32xf32>
    %125 = arith.mulf %118, %124 : vector<2x32xf32>
    %126 = vector.extract_strided_slice %12 {offsets = [12, 0], sizes = [2, 128], strides = [1, 1]} : vector<16x128xf32> to vector<2x128xf32>
    %cst_26 = arith.constant dense<0.000000e+00> : vector<2x128xf32>
    %127 = tpu.matmul %125, %13, %cst_26 {dimension_numbers = #tpu.dot_dimension_numbers<[1], [0], [0], [1], [0, 0, 1, 1], [], []>} : vector<2x32xf32>, vector<32x128xf32>, vector<2x128xf32> -> vector<2x128xf32>
    %128 = arith.addf %126, %127 : vector<2x128xf32>
    %129 = arith.negf %128 : vector<2x128xf32>
    %130 = math.exp %129 : vector<2x128xf32>
    %cst_27 = arith.constant 1.000000e+00 : f32
    %131 = vector.broadcast %cst_27 : f32 to vector<2x128xf32>
    %132 = arith.addf %131, %130 : vector<2x128xf32>
    %133 = arith.divf %131, %132 : vector<2x128xf32>
    %134 = vector.extract_strided_slice %133 {offsets = [0, 0], sizes = [2, 32], strides = [1, 1]} : vector<2x128xf32> to vector<2x32xf32>
    %135 = vector.extract_strided_slice %133 {offsets = [0, 32], sizes = [2, 32], strides = [1, 1]} : vector<2x128xf32> to vector<2x32xf32>
    %136 = vector.extract_strided_slice %133 {offsets = [0, 96], sizes = [2, 32], strides = [1, 1]} : vector<2x128xf32> to vector<2x32xf32>
    %137 = vector.extract_strided_slice %128 {offsets = [0, 64], sizes = [2, 32], strides = [1, 1]} : vector<2x128xf32> to vector<2x32xf32>
    %138 = math.tanh %137 : vector<2x32xf32>
    %139 = arith.mulf %135, %123 : vector<2x32xf32>
    %140 = arith.mulf %134, %138 : vector<2x32xf32>
    %141 = arith.addf %139, %140 : vector<2x32xf32>
    %142 = math.tanh %141 : vector<2x32xf32>
    %143 = arith.mulf %136, %142 : vector<2x32xf32>
    %144 = vector.extract_strided_slice %12 {offsets = [14, 0], sizes = [2, 128], strides = [1, 1]} : vector<16x128xf32> to vector<2x128xf32>
    %cst_28 = arith.constant dense<0.000000e+00> : vector<2x128xf32>
    %145 = tpu.matmul %143, %13, %cst_28 {dimension_numbers = #tpu.dot_dimension_numbers<[1], [0], [0], [1], [0, 0, 1, 1], [], []>} : vector<2x32xf32>, vector<32x128xf32>, vector<2x128xf32> -> vector<2x128xf32>
    %146 = arith.addf %144, %145 : vector<2x128xf32>
    %147 = arith.negf %146 : vector<2x128xf32>
    %148 = math.exp %147 : vector<2x128xf32>
    %cst_29 = arith.constant 1.000000e+00 : f32
    %149 = vector.broadcast %cst_29 : f32 to vector<2x128xf32>
    %150 = arith.addf %149, %148 : vector<2x128xf32>
    %151 = arith.divf %149, %150 : vector<2x128xf32>
    %152 = vector.extract_strided_slice %151 {offsets = [0, 0], sizes = [2, 32], strides = [1, 1]} : vector<2x128xf32> to vector<2x32xf32>
    %153 = vector.extract_strided_slice %151 {offsets = [0, 32], sizes = [2, 32], strides = [1, 1]} : vector<2x128xf32> to vector<2x32xf32>
    %154 = vector.extract_strided_slice %151 {offsets = [0, 96], sizes = [2, 32], strides = [1, 1]} : vector<2x128xf32> to vector<2x32xf32>
    %155 = vector.extract_strided_slice %146 {offsets = [0, 64], sizes = [2, 32], strides = [1, 1]} : vector<2x128xf32> to vector<2x32xf32>
    %156 = math.tanh %155 : vector<2x32xf32>
    %157 = arith.mulf %153, %141 : vector<2x32xf32>
    %158 = arith.mulf %152, %156 : vector<2x32xf32>
    %159 = arith.addf %157, %158 : vector<2x32xf32>
    %160 = math.tanh %159 : vector<2x32xf32>
    %161 = arith.mulf %154, %160 : vector<2x32xf32>
    %c0_30 = arith.constant 0 : index
    %c0_31 = arith.constant 0 : index
    %c0_32 = arith.constant 0 : index
    %162 = vector.load %arg6[%c0_30, %c0_31, %c0_32] : memref<2x2x32xf32, #tpu.memory_space<vmem>>, vector<1x2x32xf32>
    %163 = vector.shape_cast %162 : vector<1x2x32xf32> to vector<2x32xf32>
    %164 = vector.shape_cast %161 : vector<2x32xf32> to vector<1x2x32xf32>
    tpu.vector_store %arg6[%c0_30, %c0_31, %c0_32], %164 {strides = array<i32>} : memref<2x2x32xf32, #tpu.memory_space<vmem>>, vector<1x2x32xf32>,
    %c1_33 = arith.constant 1 : index
    %c0_34 = arith.constant 0 : index
    %c0_35 = arith.constant 0 : index
    %165 = vector.load %arg6[%c1_33, %c0_34, %c0_35] : memref<2x2x32xf32, #tpu.memory_space<vmem>>, vector<1x2x32xf32>
    %166 = vector.shape_cast %165 : vector<1x2x32xf32> to vector<2x32xf32>
    %167 = vector.shape_cast %159 : vector<2x32xf32> to vector<1x2x32xf32>
    tpu.vector_store %arg6[%c1_33, %c0_34, %c0_35], %167 {strides = array<i32>} : memref<2x2x32xf32, #tpu.memory_space<vmem>>, vector<1x2x32xf32>,
    %168 = tpu.concatenate %35, %53, %71, %89, %107, %125, %143, %161 in 0 : vector<2x32xf32>, vector<2x32xf32>, vector<2x32xf32>, vector<2x32xf32>, vector<2x32xf32>, vector<2x32xf32>, vector<2x32xf32>, vector<2x32xf32> -> vector<16x32xf32>
    tpu.wait_dma2 semaphore(%arg8 : memref<!tpu.dma_semaphore, #tpu.memory_space<semaphore_mem>>) src(%arg4 : memref<56x128xf32, #tpu.memory_space<any>>) dst(%arg7 : memref<56x128xf32, #tpu.memory_space<vmem>>)
    %c0_36 = arith.constant 0 : index
    %c0_37 = arith.constant 0 : index
    %169 = vector.load %arg7[%c0_36, %c0_37] : memref<56x128xf32, #tpu.memory_space<vmem>>, vector<32x32xf32>
    %c32 = arith.constant 32 : index
    %c0_38 = arith.constant 0 : index
    %170 = vector.load %arg7[%c32, %c0_38] : memref<56x128xf32, #tpu.memory_space<vmem>>, vector<1x32xf32>
    %c40 = arith.constant 40 : index
    %c0_39 = arith.constant 0 : index
    %171 = vector.load %arg7[%c40, %c0_39] : memref<56x128xf32, #tpu.memory_space<vmem>>, vector<1x32xf32>
    %c48 = arith.constant 48 : index
    %c0_40 = arith.constant 0 : index
    %172 = vector.load %arg7[%c48, %c0_40] : memref<56x128xf32, #tpu.memory_space<vmem>>, vector<1x1xf32>
    %cst_41 = arith.constant dense<0.000000e+00> : vector<16x32xf32>
    %173 = tpu.matmul %168, %169, %cst_41 {dimension_numbers = #tpu.dot_dimension_numbers<[1], [0], [0], [1], [0, 0, 1, 1], [], []>} : vector<16x32xf32>, vector<32x32xf32>, vector<16x32xf32> -> vector<16x32xf32>
    %174 = vector.broadcast %170 : vector<1x32xf32> to vector<16x32xf32>
    %175 = arith.addf %173, %174 : vector<16x32xf32>
    %cst_42 = arith.constant 0.000000e+00 : f32
    %176 = vector.broadcast %cst_42 : f32 to vector<16x32xf32>
    %177 = arith.maximumf %175, %176 : vector<16x32xf32>
    %178 = tpu.transpose %177, [1, 0] : vector<16x32xf32> -> vector<32x16xf32>
    %cst_43 = arith.constant dense<0.000000e+00> : vector<1x16xf32>
    %179 = tpu.matmul %171, %178, %cst_43 {dimension_numbers = #tpu.dot_dimension_numbers<[1], [0], [0], [1], [0, 0, 1, 1], [], []>} : vector<1x32xf32>, vector<32x16xf32>, vector<1x16xf32> -> vector<1x16xf32>
    %180 = vector.broadcast %172 : vector<1x1xf32> to vector<1x16xf32>
    %181 = arith.addf %179, %180 : vector<1x16xf32>
    %c0_44 = arith.constant 0 : index
    %c0_45 = arith.constant 0 : index
    %182 = vector.load %arg5[%c0_44, %c0_45] : memref<1x16xf32, #tpu.memory_space<vmem>>, vector<1x16xf32>
    tpu.vector_store %arg5[%c0_44, %c0_45], %181 {strides = array<i32>} : memref<1x16xf32, #tpu.memory_space<vmem>>, vector<1x16xf32>,
    return
  }
  func.func @transform_0(%arg0: i32) -> (i32, i32) {
    %c0_i32 = arith.constant 0 : i32
    %c0_i32_0 = arith.constant 0 : i32
    %c0_i32_1 = arith.constant 0 : i32
    return %c0_i32, %c0_i32_0 : i32, i32
  }
  func.func @transform_1(%arg0: i32) -> (i32, i32, i32) {
    %c0_i32 = arith.constant 0 : i32
    %c0_i32_0 = arith.constant 0 : i32
    %c0_i32_1 = arith.constant 0 : i32
    %c0_i32_2 = arith.constant 0 : i32
    return %c0_i32, %c0_i32_0, %c0_i32_1 : i32, i32, i32
  }
  func.func @transform_2(%arg0: i32) -> (i32, i32) {
    %c0_i32 = arith.constant 0 : i32
    %c0_i32_0 = arith.constant 0 : i32
    %c0_i32_1 = arith.constant 0 : i32
    return %c0_i32, %c0_i32_0 : i32, i32
  }
  func.func @transform_4(%arg0: i32) -> (i32, i32) {
    %c0_i32 = arith.constant 0 : i32
    %c0_i32_0 = arith.constant 0 : i32
    %c0_i32_1 = arith.constant 0 : i32
    return %c0_i32, %c0_i32_0 : i32, i32
  }
  func.func @transform_5(%arg0: i32) -> (i32, i32, i32) {
    %c0_i32 = arith.constant 0 : i32
    %c0_i32_0 = arith.constant 0 : i32
    %c0_i32_1 = arith.constant 0 : i32
    %c0_i32_2 = arith.constant 0 : i32
    return %c0_i32, %c0_i32_0, %c0_i32_1 : i32, i32, i32
  }
}

</mosaic_0001>

<bundles_post_ra>
// kernel: qnetwork_lstm2_forward.1
= control target key start
LH: loop header
LB: loop body
LE: loop exit
PB: predicated region body
PF: predicated region fallthrough
CT: control target
= control target key end

     0   :  { %vm44_vm0 = vcmask 1043456   ;;  %vm37_vm1 = vcmask 97280   ;;  %vm1678_vm2 = vmmov 1   ;;  %v1679_v13 = vmov 0.0|0.0   ;;  %s1682_s22 = smov 64   ;;  %s1683_s25 = smov 32   ;;  %s1923_s2 = inlined_call_operand.vmem [shape: f32[96,128], index: 2, kind: input, shape index: {}]   ;;  %s1924_s0 = inlined_call_operand.vmem [shape: f32[16,12], index: 0, kind: input, shape index: {}]   ;;  %s1925_s1 = inlined_call_operand.vmem [shape: f32[2,2,32], index: 1, kind: input, shape index: {}]   ;;  %s1926_s3 = inlined_call_operand.hbm [shape: f32[56,128], index: 3, kind: input, shape index: {}]   ;;  %s1927_s4 = inlined_call_operand.vmem [shape: f32[1,16], index: 4, kind: output, shape index: {0}]   ;;  %s1928_s5 = inlined_call_operand.vmem [shape: f32[2,2,32], index: 5, kind: output, shape index: {1}]  }
   0x1   :  { %v30_v0 = vld [vmem:[%s1923_s2] sm:$0xff]  ;;  %v31_v1 = vld [vmem:[%s1923_s2 + $0x8] sm:$0xf]  ;;  %vm1506_vm3 = vmpackc.low %vm44_vm0, %vm1678_vm2  ;;  %vm134_vm4 = vcmask 261120   ;;  %vm1680_vm5 = vmmov 0   ;;  %v1681_v18 = vmov 0.0  }
   0x2   :  { %v1505_v2 = vpack.c.bf16 %v31_v1, %v30_v0  ;;  %v28_v3 = vld [vmem:[%s1924_s0] sm:$0xff]  ;;  %v125_v4 = vld [vmem:[%s1923_s2 + $0x18] sm:$0xff]  ;;  %v29_v7 = vld [vmem:[%s1924_s0 + $0x8] sm:$0xff]  ;;  %vm1081_vm6 = vcmask 1041408   ;;  %vm1084_vm7 = vcmask 1045504   ;;  %s1654_s29 = scalar_lea.hbm %s1926_s3, 896 }
   0x3   :  { %1385 = vmatprep.mubr.msk.f32.mxu0 %vm37_vm1, %v28_v3  ;;  %v126_v5 = vld [vmem:[%s1923_s2 + $0x20] sm:$0xff]  ;;  %v216_v8 = vld [vmem:[%s1923_s2 + $0x38] sm:$0xff]  ;;  %v127_v11 = vld [vmem:[%s1923_s2 + $0x28] sm:$0xff]  ;;  %p1655_p0 = scmp.ne.s32.totalorder %s1926_s3, %s1654_s29  ;;  %p1658_p1 = scmp.lt.u32.totalorder %s1654_s29, %s1926_s3 }
   0x4   :  { %1507 = vmatprep.subr.msk.bf16.mxu0 %vm1506_vm3, %v1505_v2  ;;  %v1511_v6 = vpack.c.bf16 %v126_v5, %v125_v4  ;;  %v217_v9 = vld [vmem:[%s1923_s2 + $0x40] sm:$0xff]  ;;  %v128_v12 = vld [vmem:[%s1923_s2 + $0x30] sm:$0xff]  ;;  %v218_v15 = vld [vmem:[%s1923_s2 + $0x48] sm:$0xff] }
   0x5   :  { %1510 = vmatpush3.bf16.msk.msra.mxu0 %vm1506_vm3, %v1505_v2  ;;  %v1744_v10 = vpack.c.bf16 %v217_v9, %v216_v8  ;;  %v1515_v14 = vpack.c.bf16 %v128_v12, %v127_v11  ;;  %v219_v16 = vld [vmem:[%s1923_s2 + $0x50] sm:$0xff]  ;;  %v220_v19 = vld [vmem:[%s1925_s1] sm:$0x3]  ;;  %v1294_v29 = vld [vmem:[%s1923_s2 + $0x58] ss:$0 sm:$0xff]  ;;  %p1660_p2 = pnand %p1658_p1, %p1655_p0 }
   0x6   :  { %1512 = vmatprep.subr.bf16.mxu1 %v1511_v6  ;;  %1519 = vmatprep.subr.bf16.mxu0 %v1679_v13  ;;  %v1761_v17 = vpack.c.bf16 %v219_v16, %v218_v15  ;;  %v1290_v20 = vld [vmem:[%s1923_s2 + $0x10] ss:$0 sm:$0xff]  ;;  %v1297_v36 = vld [vmem:[%s1925_s1 + $0x2] sm:$0x3]  ;;  %s1684_s1 = smov 96   ;;  %s1685_s2 = smov [#allocation2]  }
   0x7   :  { %1514 = vmatpush3.bf16.msra.mxu1 %v1511_v6  ;;  %s24_s26 = sshll.u32 %s1685_s2, 4  ;;  %s25_s26 = int_to_ptr.vmem [resolvable:$true] %s24_s26 }
   0x8   :  { %1386 = vmatmul.mubr.msk.f32.vlgmr.msra.gmra.mrb[0].mxu0 %vm37_vm1, %v29_v7  ;;  %1516 = vmatprep.subr.bf16.mxu1 %v1515_v14 }
   0x9   :  { %1521 = vmatpush3.bf16.msra.mxu0 %v1744_v10  ;;  %1407 = vmatprep.mubr.msk.f32.mxu0 %vm1680_vm5, %v1681_v18 }
   0xa   :  { %1522 = vmatprep.subr.bf16.mxu0 %v1679_v13 }
   0xb   :  { %1518 = vmatpush3.bf16.msra.mxu1 %v1515_v14 }
   0xc   :  { %1525 = vmatprep.subr.bf16.mxu1 %v1679_v13 }
   0xd   :  { %1524 = vmatpush3.bf16.msra.mxu0 %v1761_v17 }
   0xe   :  { %1531 = vmatprep.subr.bf16.mxu0 %v1679_v13 }
  0x10   :  { %1408 = vmatmul.mubr.msk.f32.vlgmr.msra.gmra.mrb[2].mxu0 %vm134_vm4, %v220_v19 }
  0x11   :  { %1533 = vmatpush3.bf16.msra.mxu0 %v1744_v10  ;;  %1429 = vmatprep.mubr.msk.f32.mxu0 %vm1680_vm5, %v1681_v18 }
  0x12   :  { %1534 = vmatprep.subr.bf16.mxu0 %v1679_v13 }
  0x15   :  { %1536 = vmatpush3.bf16.msra.mxu0 %v1761_v17 }
  0x16   :  { %1543 = vmatprep.subr.bf16.mxu0 %v1679_v13 }
  0xdb   :  { %v1387_v21 = vpop.f32.mrb[0].mxu0 }
  0xdc   :  { %v120_v22 = vadd.f32 %v1387_v21, %v1290_v20  ;;  %v114_v23 = vpop.f32.mrb[1].mxu0 }
  0xdd   :  { %v115_v24 = vadd.f32 %v1290_v20, %v114_v23 }
  0xde   :  { %v124_v26 = vmax.f32 %v120_v22, 0.0 }
  0xdf   :  { %v123_v25 = vmax.f32 %v115_v24, 0.0 }
  0xe1   :  { %1396 = vmatprep.mubr.msk.f32.mxu1 %vm134_vm4, %v123_v25 }
  0xe2   :  { %1397 = vmatmul.mubr.msk.f32.vlgmr.msra.gmra.mrb[0].mxu1 %vm134_vm4, %v124_v26 }
  0xe3   :  { %1527 = vmatpush3.bf16.msra.mxu1 %v1744_v10  ;;  %1418 = vmatprep.mubr.msk.f32.mxu1 %vm1680_vm5, %v1681_v18  ;;  %v292_v27 = vpop.f32.mrb[2].mxu0 }
  0xe4   :  { %1528 = vmatprep.subr.bf16.mxu1 %v1679_v13  ;;  %v1409_v28 = vpop.f32.mrb[3].mxu0 }
  0xe7   :  { %1530 = vmatpush3.bf16.msra.mxu1 %v1761_v17 }
  0xe8   :  { %1537 = vmatprep.subr.bf16.mxu1 %v1679_v13 }
 0x1b5   :  { %v1398_v30 = vpop.f32.mrb[0].mxu1 }
 0x1b6   :  { %v1792_v31 = vadd.f32 %v1398_v30, %v1294_v29  ;;  %v207_v32 = vpop.f32.mrb[1].mxu1 }
 0x1b7   :  { %v1794_v33 = vadd.f32 %v1294_v29, %v207_v32 }
 0x1b9   :  { %v296_v34 = vadd.f32 %v292_v27, %v1794_v33 }
 0x1bb   :  { %1588 = vtanh.f32 %v296_v34  ;;  %v1299_v37 = vmul.f32 -1.442695, %v296_v34 }
 0x1bd   :  { %1590 = vpow2.f32 %v1299_v37 }
 0x1c5   :  { %v1589_v35 = vpop.eup %1588 }
 0x1c6   :  { %310 = vrot.lane.b32.xlu0 %v1589_v35, %s1682_s22 }
 0x1c7   :  { %v1591_v38 = vpop.eup %1590 }
 0x1c8   :  { %v300_v39 = vadd.f32 1.0, %v1591_v38 }
 0x1ca   :  { %305 = vrot.lane.b32.xlu0 %v1297_v36, %s1683_s25  ;;  %1592 = vrcp.f32 %v300_v39 }
 0x1d4   :  { %v1593_v40 = vpop.eup %1592 }
 0x238   :  { %v311_v41 = vpop.permute.xlu0 %310 }
 0x239   :  { %v313_v42 = vmul.f32 %v1593_v40, %v311_v41 }
 0x23b   :  { %315 = vrot.lane.b32.xlu1 %v313_v42, %s1683_s25 }
 0x23c   :  { %v306_v43 = vpop.permute.xlu0 %305 }
 0x23d   :  { %v308_v44 = vmul.f32 %v1593_v40, %v306_v43 }
 0x2ad   :  { %v316_v45 = vpop.permute.xlu1 %315 }
 0x2ae   :  { %v318_v46 = vadd.f32 %v316_v45, %v308_v44 }
 0x2b0   :  { %1594 = vtanh.f32 %v318_v46  ;;  %v412_v62 = vrot.slane %v318_v46, 6 }
 0x2ba   :  { %v1595_v47 = vpop.eup %1594 }
 0x2bb   :  { %321 = vrot.lane.b32.xlu1 %v1595_v47, %s1682_s22 }
 0x32d   :  { %v322_v48 = vpop.permute.xlu1 %321 }
 0x32e   :  { %v1804_v49 = vmul.f32 %v1593_v40, %v322_v48 }
 0x330   :  { %326 = vrot.lane.b32.xlu0 %v1804_v49, %s1683_s25 }
 0x3a2   :  { %v327_v50 = vpop.permute.xlu0 %326 }
 0x3a3   :  { %1419 = vmatmul.mubr.msk.f32.vlgmr.msra.gmra.mrb[2].mxu1 %vm134_vm4, %v327_v50 }
 0x3a4   :  { %1539 = vmatpush3.bf16.msra.mxu1 %v1744_v10  ;;  %1440 = vmatprep.mubr.msk.f32.mxu1 %vm1680_vm5, %v1681_v18 }
 0x3a5   :  { %1540 = vmatprep.subr.bf16.mxu1 %v1679_v13 }
 0x3a8   :  { %1542 = vmatpush3.bf16.msra.mxu1 %v1761_v17 }
 0x3a9   :  { %1549 = vmatprep.subr.bf16.mxu1 %v1679_v13 }
 0x476   :  { %v396_v51 = vpop.f32.mrb[2].mxu1 }
 0x477   :  { %v401_v52 = vrot.slane %v396_v51, 6  ;;  %v1420_v53 = vpop.f32.mrb[3].mxu1 }
 0x479   :  { %v403_v54 = vadd.f32 %v401_v52, %v1794_v33 }
 0x47b   :  { %1596 = vtanh.f32 %v403_v54  ;;  %v1301_v56 = vmul.f32 -1.442695, %v403_v54 }
 0x47d   :  { %1598 = vpow2.f32 %v1301_v56 }
 0x485   :  { %v1597_v55 = vpop.eup %1596 }
 0x486   :  { %416 = vrot.lane.b32.xlu1 %v1597_v55, %s1682_s22 }
 0x487   :  { %v1599_v57 = vpop.eup %1598 }
 0x488   :  { %v407_v58 = vadd.f32 1.0, %v1599_v57 }
 0x48a   :  { %1600 = vrcp.f32 %v407_v58 }
 0x494   :  { %v1601_v59 = vpop.eup %1600 }
 0x495   :  { %v414_v63 = vmul.f32 %v1601_v59, %v412_v62 }
 0x4f8   :  { %v417_v60 = vpop.permute.xlu1 %416 }
 0x4f9   :  { %v419_v61 = vmul.f32 %v1601_v59, %v417_v60 }
 0x4fb   :  { %421 = vrot.lane.b32.xlu0 %v419_v61, %s1683_s25 }
 0x56d   :  { %v422_v0 = vpop.permute.xlu0 %421 }
 0x56e   :  { %v424_v1 = vadd.f32 %v422_v0, %v414_v63 }
 0x570   :  { %1602 = vtanh.f32 %v424_v1  ;;  %v519_v22 = vrot.slane %v424_v1, 6 }
 0x57a   :  { %v1603_v2 = vpop.eup %1602 }
 0x57b   :  { %427 = vrot.lane.b32.xlu1 %v1603_v2, %s1682_s22 }
 0x5ed   :  { %v428_v3 = vpop.permute.xlu1 %427 }
 0x5ee   :  { %v430_v4 = vmul.f32 %v1601_v59, %v428_v3 }
 0x5f0   :  { %v432_v5 = vrot.slane %v430_v4, 2  ;;  %v1082_v29 = vsel %vm1081_vm6, %v1804_v49, %v430_v4 }
 0x5f2   :  { %433 = vrot.lane.b32.xlu0 %v432_v5, %s1683_s25 }
 0x664   :  { %v434_v6 = vpop.permute.xlu0 %433 }
 0x665   :  { %1430 = vmatmul.mubr.msk.f32.vlgmr.msra.gmra.mrb[4].mxu0 %vm134_vm4, %v434_v6 }
 0x666   :  { %1545 = vmatpush3.bf16.msra.mxu0 %v1744_v10  ;;  %1451 = vmatprep.mubr.msk.f32.mxu0 %vm1680_vm5, %v1681_v18 }
 0x667   :  { %1546 = vmatprep.subr.bf16.mxu0 %v1679_v13 }
 0x66a   :  { %1548 = vmatpush3.bf16.msra.mxu0 %v1761_v17 }
 0x66b   :  { %1555 = vmatprep.subr.bf16.mxu0 %v1679_v13 }
 0x738   :  { %v503_v7 = vpop.f32.mrb[4].mxu0 }
 0x739   :  { %v508_v8 = vrot.slane %v503_v7, 4  ;;  %v1431_v9 = vpop.f32.mrb[5].mxu0 }
 0x73b   :  { %v510_v11 = vadd.f32 %v508_v8, %v1794_v33 }
 0x73d   :  { %1604 = vtanh.f32 %v510_v11  ;;  %v1303_v14 = vmul.f32 -1.442695, %v510_v11 }
 0x73f   :  { %1606 = vpow2.f32 %v1303_v14 }
 0x747   :  { %v1605_v12 = vpop.eup %1604 }
 0x748   :  { %523 = vrot.lane.b32.xlu1 %v1605_v12, %s1682_s22 }
 0x749   :  { %v1607_v15 = vpop.eup %1606 }
 0x74a   :  { %v514_v16 = vadd.f32 1.0, %v1607_v15 }
 0x74c   :  { %1608 = vrcp.f32 %v514_v16 }
 0x756   :  { %v1609_v19 = vpop.eup %1608 }
 0x757   :  { %v521_v23 = vmul.f32 %v1609_v19, %v519_v22 }
 0x7ba   :  { %v524_v20 = vpop.permute.xlu1 %523 }
 0x7bb   :  { %v526_v21 = vmul.f32 %v1609_v19, %v524_v20 }
 0x7bd   :  { %528 = vrot.lane.b32.xlu0 %v526_v21, %s1683_s25 }
 0x82f   :  { %v529_v24 = vpop.permute.xlu0 %528 }
 0x830   :  { %v531_v25 = vadd.f32 %v529_v24, %v521_v23 }
 0x832   :  { %1610 = vtanh.f32 %v531_v25  ;;  %v626_v46 = vrot.slane %v531_v25, 6 }
 0x83c   :  { %v1611_v26 = vpop.eup %1610 }
 0x83d   :  { %534 = vrot.lane.b32.xlu1 %v1611_v26, %s1682_s22 }
 0x8af   :  { %v535_v27 = vpop.permute.xlu1 %534 }
 0x8b0   :  { %v537_v28 = vmul.f32 %v1609_v19, %v535_v27 }
 0x8b2   :  { %v539_v30 = vrot.slane %v537_v28, 4  ;;  %v1083_v32 = vsel %vm44_vm0, %v1082_v29, %v537_v28 }
 0x8b4   :  { %540 = vrot.lane.b32.xlu0 %v539_v30, %s1683_s25 }
 0x926   :  { %v541_v34 = vpop.permute.xlu0 %540 }
 0x927   :  { %1441 = vmatmul.mubr.msk.f32.vlgmr.msra.gmra.mrb[4].mxu1 %vm134_vm4, %v541_v34 }
 0x928   :  { %1551 = vmatpush3.bf16.msra.mxu1 %v1744_v10  ;;  %1462 = vmatprep.mubr.msk.f32.mxu1 %vm1680_vm5, %v1681_v18 }
 0x929   :  { %1552 = vmatprep.subr.bf16.mxu1 %v1679_v13 }
 0x92c   :  { %1554 = vmatpush3.bf16.msra.mxu1 %v1761_v17 }
 0x92d   :  { %1561 = vmatprep.subr.bf16.mxu1 %v1679_v13 }
 0x9fa   :  { %v610_v35 = vpop.f32.mrb[4].mxu1 }
 0x9fb   :  { %v615_v36 = vrot.slane %v610_v35, 2  ;;  %v1442_v37 = vpop.f32.mrb[5].mxu1 }
 0x9fd   :  { %v617_v38 = vadd.f32 %v615_v36, %v1794_v33 }
 0x9ff   :  { %1612 = vtanh.f32 %v617_v38  ;;  %v1305_v40 = vmul.f32 -1.442695, %v617_v38 }
 0xa01   :  { %1614 = vpow2.f32 %v1305_v40 }
 0xa09   :  { %v1613_v39 = vpop.eup %1612 }
 0xa0a   :  { %630 = vrot.lane.b32.xlu1 %v1613_v39, %s1682_s22 }
 0xa0b   :  { %v1615_v41 = vpop.eup %1614 }
 0xa0c   :  { %v621_v42 = vadd.f32 1.0, %v1615_v41 }
 0xa0e   :  { %1616 = vrcp.f32 %v621_v42 }
 0xa18   :  { %v1617_v43 = vpop.eup %1616 }
 0xa19   :  { %v628_v47 = vmul.f32 %v1617_v43, %v626_v46 }
 0xa7c   :  { %v631_v44 = vpop.permute.xlu1 %630 }
 0xa7d   :  { %v633_v45 = vmul.f32 %v1617_v43, %v631_v44 }
 0xa7f   :  { %635 = vrot.lane.b32.xlu0 %v633_v45, %s1683_s25 }
 0xaf1   :  { %v636_v48 = vpop.permute.xlu0 %635 }
 0xaf2   :  { %v638_v49 = vadd.f32 %v636_v48, %v628_v47 }
 0xaf4   :  { %1618 = vtanh.f32 %v638_v49  ;;  %v730_v1 = vrot.slane %v638_v49, 6 }
 0xafe   :  { %v1619_v33 = vpop.eup %1618 }
 0xaff   :  { %641 = vrot.lane.b32.xlu1 %v1619_v33, %s1682_s22 }
 0xb71   :  { %v642_v50 = vpop.permute.xlu1 %641 }
 0xb72   :  { %v644_v51 = vmul.f32 %v1617_v43, %v642_v50 }
 0xb74   :  { %v646_v52 = vrot.slane %v644_v51, 6  ;;  %v1847_v53 = vsel %vm1084_vm7, %v1083_v32, %v644_v51 }
 0xb76   :  { %647 = vrot.lane.b32.xlu0 %v646_v52, %s1683_s25 }
 0xbe8   :  { %v648_v54 = vpop.permute.xlu0 %647 }
 0xbe9   :  { %1452 = vmatmul.mubr.msk.f32.vlgmr.msra.gmra.mrb[6].mxu0 %vm134_vm4, %v648_v54 }
 0xbea   :  { %1557 = vmatpush3.bf16.msra.mxu0 %v1744_v10  ;;  %1473 = vmatprep.mubr.msk.f32.mxu0 %vm1680_vm5, %v1681_v18 }
 0xbeb   :  { %1558 = vmatprep.subr.bf16.mxu0 %v1679_v13 }
 0xbee   :  { %1560 = vmatpush3.bf16.msra.mxu0 %v1761_v17 }
 0xcbc   :  { %v717_v55 = vpop.f32.mrb[6].mxu0 }
 0xcbd   :  { %v721_v56 = vadd.f32 %v717_v55, %v1792_v31  ;;  %v1453_v57 = vpop.f32.mrb[7].mxu0 }
 0xcbf   :  { %1620 = vtanh.f32 %v721_v56  ;;  %v1307_v59 = vmul.f32 -1.442695, %v721_v56 }
 0xcc1   :  { %1622 = vpow2.f32 %v1307_v59 }
 0xcc9   :  { %v1621_v58 = vpop.eup %1620 }
 0xcca   :  { %734 = vrot.lane.b32.xlu1 %v1621_v58, %s1682_s22 }
 0xccb   :  { %v1623_v60 = vpop.eup %1622 }
 0xccc   :  { %v725_v61 = vadd.f32 1.0, %v1623_v60 }
 0xcce   :  { %1624 = vrcp.f32 %v725_v61 }
 0xcd8   :  { %v1625_v62 = vpop.eup %1624 }
 0xcd9   :  { %v732_v2 = vmul.f32 %v1625_v62, %v730_v1 }
 0xd3c   :  { %v735_v63 = vpop.permute.xlu1 %734 }
 0xd3d   :  { %v737_v0 = vmul.f32 %v1625_v62, %v735_v63 }
 0xd3f   :  { %739 = vrot.lane.b32.xlu0 %v737_v0, %s1683_s25 }
 0xdb1   :  { %v740_v3 = vpop.permute.xlu0 %739 }
 0xdb2   :  { %v742_v4 = vadd.f32 %v740_v3, %v732_v2 }
 0xdb4   :  { %1626 = vtanh.f32 %v742_v4 }
 0xdbe   :  { %v1627_v5 = vpop.eup %1626 }
 0xdbf   :  { %745 = vrot.lane.b32.xlu1 %v1627_v5, %s1682_s22 }
 0xe31   :  { %v746_v6 = vpop.permute.xlu1 %745 }
 0xe32   :  { %v1860_v7 = vmul.f32 %v1625_v62, %v746_v6 }
 0xe34   :  { %750 = vrot.lane.b32.xlu0 %v1860_v7, %s1683_s25 }
 0xea6   :  { %v751_v8 = vpop.permute.xlu0 %750 }
 0xea7   :  { %1463 = vmatmul.mubr.msk.f32.vlgmr.msra.gmra.mrb[6].mxu1 %vm134_vm4, %v751_v8 }
 0xea8   :  { %1563 = vmatpush3.bf16.msra.mxu1 %v1744_v10  ;;  %1484 = vmatprep.mubr.msk.f32.mxu1 %vm1680_vm5, %v1681_v18 }
 0xea9   :  { %1564 = vmatprep.subr.bf16.mxu1 %v1679_v13 }
 0xeac   :  { %1566 = vmatpush3.bf16.msra.mxu1 %v1761_v17  ;;  %v836_v17 = vrot.slane %v742_v4, 6 }
 0xf7a   :  { %v820_v9 = vpop.f32.mrb[6].mxu1 }
 0xf7b   :  { %v825_v11 = vrot.slane %v820_v9, 6  ;;  %v1464_v12 = vpop.f32.mrb[7].mxu1 }
 0xf7d   :  { %v827_v14 = vadd.f32 %v825_v11, %v1792_v31 }
 0xf7f   :  { %1628 = vtanh.f32 %v827_v14  ;;  %v1309_v16 = vmul.f32 -1.442695, %v827_v14 }
 0xf81   :  { %1630 = vpow2.f32 %v1309_v16 }
 0xf89   :  { %v1629_v15 = vpop.eup %1628 }
 0xf8a   :  { %840 = vrot.lane.b32.xlu1 %v1629_v15, %s1682_s22 }
 0xf8b   :  { %v1631_v19 = vpop.eup %1630 }
 0xf8c   :  { %v831_v10 = vadd.f32 1.0, %v1631_v19 }
 0xf8e   :  { %1632 = vrcp.f32 %v831_v10 }
 0xf98   :  { %v1633_v20 = vpop.eup %1632 }
 0xf99   :  { %v838_v23 = vmul.f32 %v1633_v20, %v836_v17 }
 0xffc   :  { %v841_v21 = vpop.permute.xlu1 %840 }
 0xffd   :  { %v843_v22 = vmul.f32 %v1633_v20, %v841_v21 }
 0xfff   :  { %845 = vrot.lane.b32.xlu0 %v843_v22, %s1683_s25 }
0x1071   :  { %v846_v24 = vpop.permute.xlu0 %845 }
0x1072   :  { %v848_v25 = vadd.f32 %v846_v24, %v838_v23 }
0x1074   :  { %1634 = vtanh.f32 %v848_v25  ;;  %v943_v44 = vrot.slane %v848_v25, 6 }
0x107e   :  { %v1635_v26 = vpop.eup %1634 }
0x107f   :  { %851 = vrot.lane.b32.xlu1 %v1635_v26, %s1682_s22 }
0x10f1   :  { %v852_v27 = vpop.permute.xlu1 %851 }
0x10f2   :  { %v854_v28 = vmul.f32 %v1633_v20, %v852_v27 }
0x10f4   :  { %v856_v29 = vrot.slane %v854_v28, 2  ;;  %v1086_v50 = vsel %vm1081_vm6, %v1860_v7, %v854_v28 }
0x10f6   :  { %857 = vrot.lane.b32.xlu0 %v856_v29, %s1683_s25 }
0x1168   :  { %v858_v30 = vpop.permute.xlu0 %857 }
0x1169   :  { %1474 = vmatmul.mubr.msk.f32.vlgmr.msra.gmra.mrb[8].mxu0 %vm134_vm4, %v858_v30 }
0x123c   :  { %v927_v32 = vpop.f32.mrb[8].mxu0 }
0x123d   :  { %v932_v34 = vrot.slane %v927_v32, 4  ;;  %v1475_v35 = vpop.f32.mrb[9].mxu0 }
0x123f   :  { %v934_v36 = vadd.f32 %v932_v34, %v1792_v31 }
0x1241   :  { %1636 = vtanh.f32 %v934_v36  ;;  %v1311_v38 = vmul.f32 -1.442695, %v934_v36 }
0x1243   :  { %1638 = vpow2.f32 %v1311_v38 }
0x124b   :  { %v1637_v37 = vpop.eup %1636 }
0x124c   :  { %947 = vrot.lane.b32.xlu1 %v1637_v37, %s1682_s22 }
0x124d   :  { %v1639_v39 = vpop.eup %1638 }
0x124e   :  { %v938_v40 = vadd.f32 1.0, %v1639_v39 }
0x1250   :  { %1640 = vrcp.f32 %v938_v40 }
0x125a   :  { %v1641_v41 = vpop.eup %1640 }
0x125b   :  { %v945_v45 = vmul.f32 %v1641_v41, %v943_v44 }
0x12be   :  { %v948_v42 = vpop.permute.xlu1 %947 }
0x12bf   :  { %v950_v43 = vmul.f32 %v1641_v41, %v948_v42 }
0x12c1   :  { %952 = vrot.lane.b32.xlu0 %v950_v43, %s1683_s25 }
0x1333   :  { %v953_v46 = vpop.permute.xlu0 %952 }
0x1334   :  { %v955_v47 = vadd.f32 %v953_v46, %v945_v45 }
0x1336   :  { %1642 = vtanh.f32 %v955_v47  ;;  %v1050_v2 = vrot.slane %v955_v47, 6 }
0x1340   :  { %v1643_v48 = vpop.eup %1642 }
0x1341   :  { %958 = vrot.lane.b32.xlu1 %v1643_v48, %s1682_s22 }
0x13b3   :  { %v959_v49 = vpop.permute.xlu1 %958 }
0x13b4   :  { %v961_v33 = vmul.f32 %v1641_v41, %v959_v49 }
0x13b6   :  { %v963_v51 = vrot.slane %v961_v33, 4  ;;  %v1087_v52 = vsel %vm44_vm0, %v1086_v50, %v961_v33 }
0x13b8   :  { %964 = vrot.lane.b32.xlu0 %v963_v51, %s1683_s25 }
0x142a   :  { %v965_v54 = vpop.permute.xlu0 %964 }
0x142b   :  { %1485 = vmatmul.mubr.msk.f32.vlgmr.msra.gmra.mrb[8].mxu1 %vm134_vm4, %v965_v54 }
0x14fe   :  { %v1034_v55 = vpop.f32.mrb[8].mxu1 }
0x14ff   :  { %v1039_v56 = vrot.slane %v1034_v55, 2  ;;  %v1486_v57 = vpop.f32.mrb[9].mxu1 }
0x1501   :  { %v1041_v58 = vadd.f32 %v1039_v56, %v1792_v31 }
0x1503   :  { %1644 = vtanh.f32 %v1041_v58  ;;  %v1313_v60 = vmul.f32 -1.442695, %v1041_v58 }
0x1505   :  { %1646 = vpow2.f32 %v1313_v60 }
0x150d   :  { %v1645_v59 = vpop.eup %1644 }
0x150e   :  { %1054 = vrot.lane.b32.xlu1 %v1645_v59, %s1682_s22 }
0x150f   :  { %v1647_v61 = vpop.eup %1646 }
0x1510   :  { %v1045_v62 = vadd.f32 1.0, %v1647_v61 }
0x1512   :  { %1648 = vrcp.f32 %v1045_v62 }
0x151c   :  { %v1649_v63 = vpop.eup %1648 }
0x151d   :  { %v1052_v3 = vmul.f32 %v1649_v63, %v1050_v2 }
0x1580   :  { %v1055_v0 = vpop.permute.xlu1 %1054 }
0x1581   :  { %v1057_v1 = vmul.f32 %v1649_v63, %v1055_v0 }
0x1583   :  { %1059 = vrot.lane.b32.xlu0 %v1057_v1, %s1683_s25 }
0x15f5   :  { %v1060_v4 = vpop.permute.xlu0 %1059 }
0x15f6   :  { %v1062_v5 = vadd.f32 %v1060_v4, %v1052_v3 }
0x15f8   :  { %1650 = vtanh.f32 %v1062_v5 }
0x1602   :  { %v1651_v31 = vpop.eup %1650 }
0x1603   :  { %1065 = vrot.lane.b32.xlu1 %v1651_v31, %s1682_s22 }
0x1607   :  { %1076 = vrot.lane.b32.xlu1 %v1062_v5, %s1684_s1 }
0x1608   :  { %1663 = shalt.err (!%p1660_p2)  }
0x1609   :  { %s1664_s9 = scalar_lea.vmem %s25_s26, 896  ;;  %p1669_p4 = scmp.lt.s32.totalorder %s25_s26, %s25_s26 }
0x160a   :  { %p1665_p3 = scmp.ne.s32.totalorder %s25_s26, %s1664_s9  ;;  %p1670_p5 = scmp.lt.s32.totalorder %s1664_s9, %s1664_s9 }
0x160c   :  { %p1671_p6 = por %p1670_p5, %p1669_p4 }
0x160e   :  { %p1672_p7 = pnand %p1671_p6, %p1665_p3 }
0x1610   :  { %1675 = shalt.err (!%p1672_p7)  }
0x1611   :  { %27 = dma.hbm_to_vmem [thread:$0]  %s1926_s3, 896, %s25_s26, [#allocation3]  ;;  %vm1073_vm8 = vcmask 261126  }
0x1675   :  { %v1066_v6 = vpop.permute.xlu1 %1065 }
0x1676   :  { %v1068_v7 = vmul.f32 %v1649_v63, %v1066_v6 }
0x1678   :  { %v1088_v8 = vsel %vm1084_vm7, %v1087_v52, %v1068_v7  ;;  %1070 = vrot.lane.b32.xlu0 %v1068_v7, %s1683_s25 }
0x1679   :  { %v1077_v9 = vpop.permute.xlu1 %1076 }
0x167a   :  { %1314 = vst.msk [vmem:[%s1928_s5 - $0x4] sm:$0xc0] %vm1073_vm8, %v1077_v9 }
0x167c   :  { %1105 = vrot.lane.b32.xlu0 %v1847_v53, %s1683_s25 }
0x16ea   :  { %v1071_v11 = vpop.permute.xlu0 %1070 }
0x16eb   :  { %1074 = vst.msk [vmem:[%s1928_s5 - $0x6] sm:$0xc0] %vm1073_vm8, %v1071_v11 }
0x16ec   :  { %1676 = dma.done.wait [#allocation3], 896 }
0x16ed   :  { %1677 = vsyncadd [#allocation3], 4294966400  ;;  %1575 = vmatprep.subr.bf16.mxu1 %v1679_v13  ;;  %1502 = vmatprep.mubr.msk.f32.mxu1 %vm1680_vm5, %v1681_v18  ;;  %v1092_v12 = vld [vmem:[#allocation2] sm:$0xff]  ;;  %v1093_v14 = vld [vmem:[#allocation2 + $0x8] sm:$0xff]  ;;  %v1686_v18 = vmov 0   ;;  %vm1274_vm10 = vcmask 122880  }
0x16ee   :  { %1107 = vrot.lane.b32.xlu0 %v1088_v8, %s1683_s25  ;;  %v1094_v15 = vld [vmem:[#allocation2 + $0x10] sm:$0xff]  ;;  %v1567_v16 = vpack.c.bf16 %v1093_v14, %v1092_v12  ;;  %v1095_v19 = vld [vmem:[#allocation2 + $0x18] sm:$0xff]  ;;  %v1106_v53 = vpop.permute.xlu0 %1105  ;;  %1652 = vset.pattern.permute.xlu1 %v1686_v18  ;;  %v1315_v21 = vld [vmem:[#allocation2 + $0x20] ss:$0 sm:$0xff] }
0x16ef   :  { %v1571_v10 = vpack.c.bf16 %v1095_v19, %v1094_v15  ;;  %1495 = vmatprep.mubr.msk.f32.mxu0 %vm134_vm4, %v1106_v53  ;;  %v1098_v13 = vld [vmem:[#allocation2 + $0x30] sm:$0x1]  ;;  %1653 = vset.pattern.permute.xlu0 %v1686_v18  ;;  %vm1577_vm9 = vmpackc.low %vm134_vm4, %vm134_vm4  ;;  %v1097_v28 = vld [vmem:[#allocation2 + $0x28] sm:$0x1] }
0x16f0   :  { %1568 = vmatprep.subr.bf16.mxu0 %v1567_v16  ;;  %1192 = vperm.xlu1 %1652, %v1098_v13  }
0x16f1   :  { %1570 = vmatpush3.bf16.msra.mxu0 %v1567_v16 }
0x16f2   :  { %1572 = vmatprep.subr.bf16.mxu0 %v1571_v10 }
0x16f5   :  { %1574 = vmatpush3.bf16.msra.mxu0 %v1571_v10 }
0x1760   :  { %v1108_v20 = vpop.permute.xlu0 %1107 }
0x1761   :  { %1496 = vmatmul.mubr.msk.f32.vlgmr.msra.gmra.mrb[10].mxu0 %vm134_vm4, %v1108_v20 }
0x176f   :  { %v1193_v29 = vpop.permute.xlu1 %1192 }
0x1834   :  { %v1497_v22 = vpop.f32.mrb[10].mxu0 }
0x1835   :  { %v1185_v17 = vadd.f32 %v1497_v22, %v1315_v21  ;;  %v1179_v23 = vpop.f32.mrb[11].mxu0 }
0x1836   :  { %v1180_v24 = vadd.f32 %v1315_v21, %v1179_v23 }
0x1837   :  { %v1189_v25 = vmax.f32 %v1185_v17, 0.0 }
0x1838   :  { %v1188_v26 = vmax.f32 %v1180_v24, 0.0 }
0x183a   :  { %v1576_v27 = vpack.c.bf16 %v1189_v25, %v1188_v26 }
0x183c   :  { %1578 = vmatpush3.bf16.xpose.msk.msra.mxu1 %vm1577_vm9, %v1576_v27 }
0x1843   :  { %1503 = vmatmul.mubr.msk.f32.vlgmr.msra.gmra.mrb[10].mxu1 %vm134_vm4, %v1097_v28 }
0x1916   :  { %v1270_v30 = vpop.f32.mrb[10].mxu1 }
0x1917   :  { %v1271_v32 = vadd.f32 %v1270_v30, %v1193_v29  ;;  %v1504_v34 = vpop.f32.mrb[11].mxu1 }
0x1919   :  { %1275 = vst.msk [vmem:[%s1927_s4] sm:$0x1] %vm1274_vm10, %v1271_v32 }
0x191a   :  { %1284 = vsyncmov [#allocation3] }
0x191d   :  { %s1285_s15 = vpop.sfrf %1284 }
0x191e   :  { %p1321_p8 = scmp.ne.s32.totalorder %s1285_s15, 0 }
0x1920   :  { %1289 = shalt.err (%p1321_p8)  }

</bundles_post_ra>
